<compile_context>
chip_gen: v6e
topology: v6e:2x2x1
jax: 0.10.0
libtpu: 0.0.40
codegen_flags: <defaults>
</compile_context>

<pallas_src>
import functools

import jax
import jax.numpy as jnp
import numpy as np
from jax.experimental import pallas as pl
from jax.experimental.pallas import tpu as pltpu

LANE = 128                            # lane width
SUBL = 8                              # sublane rows per vreg
TILE_BUDGET_BYTES = 4 * 1024 * 1024   # combined pred+target bytes per grid step
VMEM_LIMIT_BYTES = 32 * 1024 * 1024   # safe on v5e/v6e (128 MiB) and v7x (64 MiB)


def _tensorcores_per_device() -> int:
    """2 on chips with 2 TensorCores per JAX device (v7x / megacore), else 1."""
    try:
        dev = jax.devices()[0]
        if dev.platform != "tpu":
            return 1
        kind = str(getattr(dev, "device_kind", "")).lower()
        # Single-TensorCore inference chips.
        if "lite" in kind or "v5e" in kind or "v6e" in kind or "v6" in kind:
            return 1
        # Megacore / v7x style chips: 2 TensorCores behind one device.
        if any(tag in kind for tag in ("v4", "v5p", "v7", "7x")):
            return 2
    except Exception:
        pass
    return 1


NCORES = _tensorcores_per_device()


def _dice_sums_kernel(pred_ref, target_ref, out_ref, *,
                      blocks_per_core, tile_rows, total_rows, need_mask, unroll):
    """Accumulate per-class partial sums for one (core, batch, row-block) step.

    pred_ref / target_ref : (1, C, TR, 128) tiles in their native dtype.
    out_ref               : (3, C, 8, 128) f32 lane-resident accumulator, resident
                            across the serial (batch, row-block) grid axes.
                            out_ref[0] = intersection, out_ref[1] = |pred > 0.5|,
                            out_ref[2] = sum(target).
    """
    core = pl.program_id(0)
    n = pl.program_id(1)
    r = pl.program_id(2)

    @pl.when(jnp.logical_and(n == 0, r == 0))
    def _init():
        out_ref[...] = jnp.zeros_like(out_ref)

    c = pred_ref.shape[1]
    nchunks = tile_rows // SUBL

    def accumulate(masked, base_row):
        # Stream the tile 8 sublane rows at a time: per-iteration live set is
        # ~4*C vregs plus the 3*C accumulator vregs (C is small for seg tasks),
        # so nothing spills and no full-tile f32 intermediates ever materialize.
        def body(i, carry):
            inter, pcnt, tsum = carry
            row0 = pl.multiple_of(i * SUBL, SUBL)
            p = pred_ref[0, :, pl.ds(row0, SUBL), :]            # (C, 8, 128) native
            t = target_ref[0, :, pl.ds(row0, SUBL), :].astype(jnp.float32)
            pb = (p > 0.5).astype(jnp.float32)                  # native-dtype compare
            if masked:
                rows = jax.lax.broadcasted_iota(jnp.int32, (c, SUBL, LANE), 1)
                valid = (base_row + row0 + rows) < total_rows
                pb = jnp.where(valid, pb, 0.0)
                t = jnp.where(valid, t, 0.0)
            return (inter + t * pb, pcnt + pb, tsum + t)

        z = jnp.zeros((c, SUBL, LANE), jnp.float32)
        inter, pcnt, tsum = jax.lax.fori_loop(0, nchunks, body, (z, z, z),
                                              unroll=unroll)
        out_ref[0] += inter
        out_ref[1] += pcnt
        out_ref[2] += tsum

    if need_mask:
        # Only the (single) partial tail block pays for the iota + selects.
        base_row = (core * blocks_per_core + r) * tile_rows
        is_partial = base_row + tile_rows > total_rows

        @pl.when(jnp.logical_not(is_partial))
        def _full():
            accumulate(False, base_row)

        @pl.when(is_partial)
        def _partial():
            accumulate(True, base_row)
    else:
        accumulate(False, 0)


@jax.jit
def _dice_sums(pred, target):
    """pred/target: (N, C, D, H, W), any dtype -> f32 (intersection, pred_count,
    target_sum), each of shape (C,)."""
    N, C, D, H, W = pred.shape
    V = D * H * W

    # Lane-dense layout without any copy when V is a multiple of 128 and large
    # enough; otherwise fall back to a zero-pad copy (zeros are neutral: pred
    # pad is never > 0.5 and target pad sums to 0).
    if V % LANE == 0 and V // LANE >= SUBL:
        Vp = V
    else:
        chunk = SUBL * LANE
        Vp = ((V + chunk - 1) // chunk) * chunk
        # TODO(synk): the ragged-V fallback pays a full zero-pad HBM copy; fuse
        # the pad into the producer (or a manual-DMA ragged kernel) if this
        # path ever becomes hot.

    def prep(x):
        x = x.reshape(N, C, V)                     # free reshape, no transpose
        if Vp != V:
            x = jnp.pad(x, ((0, 0), (0, 0), (0, Vp - V)))
        return x.reshape(N, C, Vp // LANE, LANE)   # free reshape

    p4 = prep(pred)
    t4 = prep(target)
    R = Vp // LANE                                 # rows per (n, c); >= 8

    # Largest row tile (multiple of 8) keeping per-step input bytes in budget.
    # Intermediates no longer materialize in VMEM, so sizing by the native
    # input itemsize is the true footprint (double-buffered by the pipeline).
    bytes_per_row = C * LANE * (pred.dtype.itemsize + target.dtype.itemsize)
    tr = max(SUBL, (TILE_BUDGET_BYTES // bytes_per_row) // SUBL * SUBL)
    tr = min(tr, (R // SUBL) * SUBL)

    # Generation-aware core split: only use >1 core when the row-blocks split
    # EXACTLY (no dead blocks -> no wasted full-tile DMA on the second core).
    ncores = NCORES
    if ncores > 1:
        cand, tr_even = tr, None
        while cand >= SUBL:
            if -(-R // cand) % ncores == 0:
                tr_even = cand
                break
            cand -= SUBL
        if tr_even is None:
            ncores = 1
        else:
            tr = tr_even

    nblocks = -(-R // tr)
    bpc = nblocks // ncores                        # exact by construction
    need_mask = nblocks * tr != R                  # only a partial tail block
    unroll = min(tr // SUBL, 8)

    kernel = functools.partial(
        _dice_sums_kernel,
        blocks_per_core=bpc, tile_rows=tr, total_rows=R,
        need_mask=need_mask, unroll=unroll)

    def in_idx(core, n, r):
        return (n, 0, core * bpc + r, 0)           # never OOB: ncores*bpc == nblocks

    partials = pl.pallas_call(
        kernel,
        out_shape=jax.ShapeDtypeStruct((ncores * 3, C, SUBL, LANE), jnp.float32),
        grid_spec=pltpu.PrefetchScalarGridSpec(
            num_scalar_prefetch=0,
            grid=(ncores, N, bpc),
            in_specs=[
                pl.BlockSpec((1, C, tr, LANE), in_idx),
                pl.BlockSpec((1, C, tr, LANE), in_idx),
            ],
            out_specs=pl.BlockSpec((3, C, SUBL, LANE),
                                   lambda core, n, r: (core, 0, 0, 0)),
        ),
        compiler_params=pltpu.CompilerParams(
            dimension_semantics=("parallel", "arbitrary", "arbitrary"),
            vmem_limit_bytes=VMEM_LIMIT_BYTES),
    )(p4, t4)

    # Tiny final reduction (48 KiB for C=4): per-core partials + lane/sublane sum.
    totals = jnp.sum(partials.reshape(ncores, 3, C, SUBL, LANE), axis=(0, 3, 4))
    return totals[0], totals[1], totals[2]


def dice_score_forward(dic, pred, target):
    """Mirrors DiceScore.forward(dic, pred, target) from the PyTorch module."""
    inter, psum, tsum = _dice_sums(pred, target)
    # No smoothing term, exactly like the PyTorch module (0/0 -> NaN preserved).
    scores = 2.0 * inter / (psum + tsum)

    out_dic = {}
    dsc = jnp.float32(0.0)
    for class_id, class_ in dic.items():
        new_class = dict(class_)
        new_class["score"] = scores[class_id]
        out_dic[class_id] = new_class
        dsc = dsc + scores[class_id]
    return out_dic, dsc / len(dic)


def _reference(dic, pred, target):
    """Pure-JAX reference matching the PyTorch semantics."""
    pred = pred.astype(jnp.float32)
    target = target.astype(jnp.float32)
    dsc = 0.0
    scores = {}
    for class_id in dic:
        cp = (pred[:, class_id].reshape(-1) > 0.5).astype(jnp.float32)
        ct = target[:, class_id].reshape(-1)
        inter = jnp.sum(ct * cp)
        s = 2.0 * inter / (jnp.sum(cp) + jnp.sum(ct))
        scores[class_id] = s
        dsc = dsc + s
    return scores, dsc / len(dic)


def _check(dic, pred, target):
    out_dic, mean_dsc = dice_score_forward(dic, pred, target)
    mean_dsc = jax.block_until_ready(mean_dsc)
    ref_scores, ref_mean = _reference(dic, pred, target)
    np.testing.assert_allclose(np.asarray(mean_dsc), np.asarray(ref_mean),
                               rtol=1e-5, atol=1e-5)
    for cid in dic:
        np.testing.assert_allclose(np.asarray(out_dic[cid]["score"]),
                                   np.asarray(ref_scores[cid]),
                                   rtol=1e-5, atol=1e-5)


if __name__ == "__main__":
    key = jax.random.PRNGKey(0)
    k1, k2, k3, k4, k5, k6 = jax.random.split(key, 6)

    # Case 1: aligned shapes, f32 inputs: (N, C, D, H, W) = (2, 4, 8, 16, 16)
    N, C, D, H, W = 2, 4, 8, 16, 16
    pred = jax.random.uniform(k1, (N, C, D, H, W), dtype=jnp.float32)
    target = (jax.random.uniform(k2, (N, C, D, H, W)) > 0.5).astype(jnp.float32)
    dic = {0: {"name": "background"}, 1: {"name": "muscle_a"},
           2: {"name": "muscle_b"}, 3: {"name": "muscle_c"}}
    _check(dic, pred, target)

    # Case 2: ragged voxel count + bf16 inputs (exercises the pad fallback and
    # the in-kernel native-dtype compare / f32 target cast).
    N2, C2, D2, H2, W2 = 1, 3, 5, 7, 9
    pred2 = jax.random.uniform(k3, (N2, C2, D2, H2, W2),
                               dtype=jnp.float32).astype(jnp.bfloat16)
    target2 = (jax.random.uniform(k4, (N2, C2, D2, H2, W2)) > 0.5
               ).astype(jnp.bfloat16)
    dic2 = {0: {"name": "bg"}, 1: {"name": "a"}, 2: {"name": "b"}}
    _check(dic2, pred2, target2)

    # Case 3: 128-aligned voxel count whose row count (13) is not a multiple of
    # the row tile -> exercises the cold masked partial-block path (and the
    # exact 2-way core split on 2-TC chips).
    N3, C3, D3, H3, W3 = 1, 2, 13, 8, 16
    pred3 = jax.random.uniform(k5, (N3, C3, D3, H3, W3), dtype=jnp.float32)
    target3 = (jax.random.uniform(k6, (N3, C3, D3, H3, W3)) > 0.5
               ).astype(jnp.float32)
    dic3 = {0: {"name": "bg"}, 1: {"name": "a"}}
    _check(dic3, pred3, target3)

    print("KERNEL_OK")
</pallas_src>

<mosaic_0001>
module attributes {stable_mosaic.version = 11 : i64} {
  func.func @_dice_sums_kernel(%arg0: i32, %arg1: i32, %arg2: i32, %arg3: memref<1x4x16x128xf32, #tpu.memory_space<vmem>>, %arg4: memref<1x4x16x128xf32, #tpu.memory_space<vmem>>, %arg5: memref<3x4x8x128xf32, #tpu.memory_space<vmem>>) attributes {dimension_semantics = [#tpu.dimension_semantics<parallel>, #tpu.dimension_semantics<arbitrary>, #tpu.dimension_semantics<arbitrary>], iteration_bounds = array<i64: 1, 2, 1>, scalar_prefetch = 0 : i64, scratch_operands = 0 : i64, tpu.core_type = #tpu.core_type<tc>, window_params = [{transform_indices = @transform_0, window_bounds = array<i64: 1, 4, 16, 128>}, {transform_indices = @transform_1, window_bounds = array<i64: 1, 4, 16, 128>}, {transform_indices = @transform_2, window_bounds = array<i64: 3, 4, 8, 128>}]} {
    %c0_i32 = arith.constant 0 : i32
    %0 = arith.cmpi eq, %arg1, %c0_i32 : i32
    %c0_i32_0 = arith.constant 0 : i32
    %1 = arith.cmpi eq, %arg2, %c0_i32_0 : i32
    %2 = arith.andi %0, %1 : i1
    %3 = arith.extui %2 : i1 to i32
    %c0_i32_1 = arith.constant 0 : i32
    %4 = arith.cmpi ne, %3, %c0_i32_1 : i32
    scf.if %4 {
      %cst_39 = arith.constant 0.000000e+00 : f32
      %56 = vector.broadcast %cst_39 : f32 to vector<3x4x8x128xf32>
      %c0_40 = arith.constant 0 : index
      %c0_41 = arith.constant 0 : index
      %c0_42 = arith.constant 0 : index
      %c0_43 = arith.constant 0 : index
      %57 = vector.load %arg5[%c0_40, %c0_41, %c0_42, %c0_43] : memref<3x4x8x128xf32, #tpu.memory_space<vmem>>, vector<3x4x8x128xf32>
      tpu.vector_store %arg5[%c0_40, %c0_41, %c0_42, %c0_43], %56 {strides = array<i32>} : memref<3x4x8x128xf32, #tpu.memory_space<vmem>>, vector<3x4x8x128xf32>,
    } else {
    }
    %cst = arith.constant 0.000000e+00 : f32
    %5 = vector.broadcast %cst : f32 to vector<4x8x128xf32>
    %c0_i32_2 = arith.constant 0 : i32
    %c8_i32 = arith.constant 8 : i32
    %6 = arith.muli %c0_i32_2, %c8_i32 : i32
    %7 = tpu.assume_multiple %6, 8 : i32
    %c0 = arith.constant 0 : index
    %c0_3 = arith.constant 0 : index
    %8 = arith.index_cast %7 : i32 to index
    %c0_4 = arith.constant 0 : index
    %9 = vector.load %arg3[%c0, %c0_3, %8, %c0_4] : memref<1x4x16x128xf32, #tpu.memory_space<vmem>>, vector<1x4x8x128xf32>
    %10 = vector.shape_cast %9 : vector<1x4x8x128xf32> to vector<4x8x128xf32>
    %c0_5 = arith.constant 0 : index
    %c0_6 = arith.constant 0 : index
    %11 = arith.index_cast %7 : i32 to index
    %c0_7 = arith.constant 0 : index
    %12 = vector.load %arg4[%c0_5, %c0_6, %11, %c0_7] : memref<1x4x16x128xf32, #tpu.memory_space<vmem>>, vector<1x4x8x128xf32>
    %13 = vector.shape_cast %12 : vector<1x4x8x128xf32> to vector<4x8x128xf32>
    %cst_8 = arith.constant 5.000000e-01 : f32
    %14 = vector.broadcast %cst_8 : f32 to vector<4x8x128xf32>
    %15 = arith.cmpf ogt, %10, %14 : vector<4x8x128xf32>
    %16 = arith.extui %15 : vector<4x8x128xi1> to vector<4x8x128xi32>
    %17 = arith.sitofp %16 : vector<4x8x128xi32> to vector<4x8x128xf32>
    %18 = arith.mulf %13, %17 : vector<4x8x128xf32>
    %19 = arith.addf %5, %18 : vector<4x8x128xf32>
    %20 = arith.addf %5, %17 : vector<4x8x128xf32>
    %21 = arith.addf %5, %13 : vector<4x8x128xf32>
    %c1_i32 = arith.constant 1 : i32
    %c8_i32_9 = arith.constant 8 : i32
    %22 = arith.muli %c1_i32, %c8_i32_9 : i32
    %23 = tpu.assume_multiple %22, 8 : i32
    %c0_10 = arith.constant 0 : index
    %c0_11 = arith.constant 0 : index
    %24 = arith.index_cast %23 : i32 to index
    %c0_12 = arith.constant 0 : index
    %25 = vector.load %arg3[%c0_10, %c0_11, %24, %c0_12] : memref<1x4x16x128xf32, #tpu.memory_space<vmem>>, vector<1x4x8x128xf32>
    %26 = vector.shape_cast %25 : vector<1x4x8x128xf32> to vector<4x8x128xf32>
    %c0_13 = arith.constant 0 : index
    %c0_14 = arith.constant 0 : index
    %27 = arith.index_cast %23 : i32 to index
    %c0_15 = arith.constant 0 : index
    %28 = vector.load %arg4[%c0_13, %c0_14, %27, %c0_15] : memref<1x4x16x128xf32, #tpu.memory_space<vmem>>, vector<1x4x8x128xf32>
    %29 = vector.shape_cast %28 : vector<1x4x8x128xf32> to vector<4x8x128xf32>
    %cst_16 = arith.constant 5.000000e-01 : f32
    %30 = vector.broadcast %cst_16 : f32 to vector<4x8x128xf32>
    %31 = arith.cmpf ogt, %26, %30 : vector<4x8x128xf32>
    %32 = arith.extui %31 : vector<4x8x128xi1> to vector<4x8x128xi32>
    %33 = arith.sitofp %32 : vector<4x8x128xi32> to vector<4x8x128xf32>
    %34 = arith.mulf %29, %33 : vector<4x8x128xf32>
    %35 = arith.addf %19, %34 : vector<4x8x128xf32>
    %36 = arith.addf %20, %33 : vector<4x8x128xf32>
    %37 = arith.addf %21, %29 : vector<4x8x128xf32>
    %c2_i32 = arith.constant 2 : i32
    %c0_17 = arith.constant 0 : index
    %c0_18 = arith.constant 0 : index
    %c0_19 = arith.constant 0 : index
    %c0_20 = arith.constant 0 : index
    %38 = vector.load %arg5[%c0_17, %c0_18, %c0_19, %c0_20] : memref<3x4x8x128xf32, #tpu.memory_space<vmem>>, vector<1x4x8x128xf32>
    %39 = vector.shape_cast %38 : vector<1x4x8x128xf32> to vector<4x8x128xf32>
    %40 = arith.addf %39, %35 : vector<4x8x128xf32>
    %c0_21 = arith.constant 0 : index
    %c0_22 = arith.constant 0 : index
    %c0_23 = arith.constant 0 : index
    %c0_24 = arith.constant 0 : index
    %41 = vector.load %arg5[%c0_21, %c0_22, %c0_23, %c0_24] : memref<3x4x8x128xf32, #tpu.memory_space<vmem>>, vector<1x4x8x128xf32>
    %42 = vector.shape_cast %41 : vector<1x4x8x128xf32> to vector<4x8x128xf32>
    %43 = vector.shape_cast %40 : vector<4x8x128xf32> to vector<1x4x8x128xf32>
    tpu.vector_store %arg5[%c0_21, %c0_22, %c0_23, %c0_24], %43 {strides = array<i32>} : memref<3x4x8x128xf32, #tpu.memory_space<vmem>>, vector<1x4x8x128xf32>,
    %c1 = arith.constant 1 : index
    %c0_25 = arith.constant 0 : index
    %c0_26 = arith.constant 0 : index
    %c0_27 = arith.constant 0 : index
    %44 = vector.load %arg5[%c1, %c0_25, %c0_26, %c0_27] : memref<3x4x8x128xf32, #tpu.memory_space<vmem>>, vector<1x4x8x128xf32>
    %45 = vector.shape_cast %44 : vector<1x4x8x128xf32> to vector<4x8x128xf32>
    %46 = arith.addf %45, %36 : vector<4x8x128xf32>
    %c1_28 = arith.constant 1 : index
    %c0_29 = arith.constant 0 : index
    %c0_30 = arith.constant 0 : index
    %c0_31 = arith.constant 0 : index
    %47 = vector.load %arg5[%c1_28, %c0_29, %c0_30, %c0_31] : memref<3x4x8x128xf32, #tpu.memory_space<vmem>>, vector<1x4x8x128xf32>
    %48 = vector.shape_cast %47 : vector<1x4x8x128xf32> to vector<4x8x128xf32>
    %49 = vector.shape_cast %46 : vector<4x8x128xf32> to vector<1x4x8x128xf32>
    tpu.vector_store %arg5[%c1_28, %c0_29, %c0_30, %c0_31], %49 {strides = array<i32>} : memref<3x4x8x128xf32, #tpu.memory_space<vmem>>, vector<1x4x8x128xf32>,
    %c2 = arith.constant 2 : index
    %c0_32 = arith.constant 0 : index
    %c0_33 = arith.constant 0 : index
    %c0_34 = arith.constant 0 : index
    %50 = vector.load %arg5[%c2, %c0_32, %c0_33, %c0_34] : memref<3x4x8x128xf32, #tpu.memory_space<vmem>>, vector<1x4x8x128xf32>
    %51 = vector.shape_cast %50 : vector<1x4x8x128xf32> to vector<4x8x128xf32>
    %52 = arith.addf %51, %37 : vector<4x8x128xf32>
    %c2_35 = arith.constant 2 : index
    %c0_36 = arith.constant 0 : index
    %c0_37 = arith.constant 0 : index
    %c0_38 = arith.constant 0 : index
    %53 = vector.load %arg5[%c2_35, %c0_36, %c0_37, %c0_38] : memref<3x4x8x128xf32, #tpu.memory_space<vmem>>, vector<1x4x8x128xf32>
    %54 = vector.shape_cast %53 : vector<1x4x8x128xf32> to vector<4x8x128xf32>
    %55 = vector.shape_cast %52 : vector<4x8x128xf32> to vector<1x4x8x128xf32>
    tpu.vector_store %arg5[%c2_35, %c0_36, %c0_37, %c0_38], %55 {strides = array<i32>} : memref<3x4x8x128xf32, #tpu.memory_space<vmem>>, vector<1x4x8x128xf32>,
    return
  }
  func.func @transform_0(%arg0: i32, %arg1: i32, %arg2: i32) -> (i32, i32, i32, i32) {
    %c1_i32 = arith.constant 1 : i32
    %0 = arith.muli %arg0, %c1_i32 : i32
    %1 = arith.addi %0, %arg2 : i32
    %c0_i32 = arith.constant 0 : i32
    %c0_i32_0 = arith.constant 0 : i32
    %c0_i32_1 = arith.constant 0 : i32
    return %arg1, %c0_i32, %1, %c0_i32_0 : i32, i32, i32, i32
  }
  func.func @transform_1(%arg0: i32, %arg1: i32, %arg2: i32) -> (i32, i32, i32, i32) {
    %c1_i32 = arith.constant 1 : i32
    %0 = arith.muli %arg0, %c1_i32 : i32
    %1 = arith.addi %0, %arg2 : i32
    %c0_i32 = arith.constant 0 : i32
    %c0_i32_0 = arith.constant 0 : i32
    %c0_i32_1 = arith.constant 0 : i32
    return %arg1, %c0_i32, %1, %c0_i32_0 : i32, i32, i32, i32
  }
  func.func @transform_2(%arg0: i32, %arg1: i32, %arg2: i32) -> (i32, i32, i32, i32) {
    %c0_i32 = arith.constant 0 : i32
    %c0_i32_0 = arith.constant 0 : i32
    %c0_i32_1 = arith.constant 0 : i32
    %c0_i32_2 = arith.constant 0 : i32
    return %arg0, %c0_i32, %c0_i32_0, %c0_i32_1 : i32, i32, i32, i32
  }
}

</mosaic_0001>

<bundles_post_ra>
// kernel: _dice_sums.1
= control target key start
LH: loop header
LB: loop body
LE: loop exit
PB: predicated region body
PF: predicated region fallthrough
CT: control target
= control target key end

     0   :  { %s568_s9 = smov 0   ;;  %s570_s10 = smov 0   ;;  %s729_s0 = inlined_call_operand.vmem [shape: f32[2,4,16,128], index: 0, kind: input, shape index: {}]   ;;  %s730_s1 = inlined_call_operand.vmem [shape: f32[2,4,16,128], index: 1, kind: input, shape index: {}]   ;;  %s731_s2 = inlined_call_operand.vmem [shape: f32[3,4,8,128], index: 2, kind: output, shape index: {}]  }
   0x1   :  { %s572_s11 = smov 0  }
   0x2 LB: > { %s27_s12 = sadd.s32 1, %s545_s10  ;;  %p456_p0 = scmp.ge.s32.totalorder %s549_s11, 1  ;;  %s549_s11 = sphi %s572_s11, %s12_s11   ;;  %s545_s10 = sphi %s570_s10, %s733_s10   ;;  %s541_s9 = sphi %s568_s9, %s732_s9  }
   0x3   : > { %p29_p1 = scmp.ge.s32.totalorder %s27_s12, 2  ;;  %p163_p2 = scmp.lt.s32.totalorder %s549_s11, 3 }
   0x5   : > { %s735_s12 = smov (%p29_p1, %s27_s12), 0  ;;  %p164_p3 = pnand %p456_p0, %p163_p2 }
   0x6   : > { %p203_p4 = scmp.lt.s32.totalorder (!%p164_p3), %s541_s9, 1  ;;  %p232_p5 = scmp.eq.s32.totalorder (!%p164_p3), %s541_s9, 0 }
   0x7   : > { %167 = sbr.rel (%p164_p3) target bundleno = 36 (0x24), region = 28 }
   0xc   : > { %s737_s9 = smov (!%p203_p4, %s541_s9), 1  ;;  %237 = sbr.rel (!%p232_p5) target bundleno = 19 (0x13), region = 32  ;;  %v551_v0 = vmov (%p232_p5), 0.0  }
   0xd   : > { %s498_s13 = sshll.u32 %s737_s9, 6  ;;  %238 = vst [vmem:[%s731_s2] sm:$0xff] (%p232_p5), %v551_v0  ;;  %239 = vst [vmem:[%s731_s2 + $0x8] sm:$0xff] (%p232_p5), %v551_v0 }
   0xe   : > { %s589_s16 = scalar_lea.vmem %s729_s0, %s498_s13  ;;  %s594_s19 = scalar_lea.vmem %s730_s1, %s498_s13  ;;  %240 = vst [vmem:[%s731_s2 + $0x10] sm:$0xff] (%p232_p5), %v551_v0  ;;  %241 = vst [vmem:[%s731_s2 + $0x18] sm:$0xff] (%p232_p5), %v551_v0 }
   0xf   : > { %242 = vst [vmem:[%s731_s2 + $0x20] sm:$0xff] (%p232_p5), %v551_v0  ;;  %243 = vst [vmem:[%s731_s2 + $0x28] sm:$0xff] (%p232_p5), %v551_v0 }
  0x10   : > { %244 = vst [vmem:[%s731_s2 + $0x30] sm:$0xff] (%p232_p5), %v551_v0  ;;  %245 = vst [vmem:[%s731_s2 + $0x38] sm:$0xff] (%p232_p5), %v551_v0 }
  0x11   : > { %246 = vst [vmem:[%s731_s2 + $0x40] sm:$0xff] %v551_v0  ;;  %247 = vst [vmem:[%s731_s2 + $0x48] sm:$0xff] %v551_v0 }
  0x12   : > { %248 = vst [vmem:[%s731_s2 + $0x50] sm:$0xff] %v551_v0  ;;  %249 = vst [vmem:[%s731_s2 + $0x58] sm:$0xff] %v551_v0 }
  0x13 PF: > { %v250_v1 = vld [vmem:[%s589_s16] sm:$0xff]  ;;  %v466_v3 = vld [vmem:[%s589_s16 + $0x8] sm:$0xff]  ;;  %v251_v5 = vld [vmem:[%s589_s16 + $0x10] sm:$0xff]  ;;  %v552_v6 = vmov 0.0  }
  0x14   : > { %v254_v2 = vld [vmem:[%s594_s19] sm:$0xff]  ;;  %vm258_vm0 = vcmp.gt.f32.partialorder %v250_v1, 0.5  ;;  %v470_v4 = vld [vmem:[%s594_s19 + $0x8] sm:$0xff]  ;;  %vm296_vm1 = vcmp.gt.f32.partialorder %v466_v3, 0.5  ;;  %v255_v9 = vld [vmem:[%s594_s19 + $0x10] sm:$0xff]  ;;  %vm259_vm2 = vcmp.gt.f32.partialorder %v251_v5, 0.5 }
  0x15   : > { %v462_v7 = vsel %vm258_vm0, 1.0, %v552_v6  ;;  %v474_v8 = vsel %vm296_vm1, 1.0, %v552_v6  ;;  %v467_v10 = vld [vmem:[%s589_s16 + $0x18] sm:$0xff]  ;;  %v320_v12 = vadd.f32 %v470_v4, %v254_v2  ;;  %v463_v15 = vsel %vm259_vm2, 1.0, %v552_v6  ;;  %v252_v16 = vld [vmem:[%s589_s16 + $0x20] sm:$0xff]  ;;  %v468_v21 = vld [vmem:[%s589_s16 + $0x28] sm:$0xff] }
  0x16   : > { %v471_v11 = vld [vmem:[%s594_s19 + $0x18] sm:$0xff]  ;;  %v270_v13 = vmul.f32 %v462_v7, %v254_v2  ;;  %v308_v14 = vmul.f32 %v474_v8, %v470_v4  ;;  %vm297_vm3 = vcmp.gt.f32.partialorder %v467_v10, 0.5  ;;  %v256_v17 = vld [vmem:[%s594_s19 + $0x20] sm:$0xff]  ;;  %v271_v19 = vmul.f32 %v463_v15, %v255_v9  ;;  %v472_v22 = vld [vmem:[%s594_s19 + $0x28] sm:$0xff] }
  0x17   : > { %v324_v18 = vld [vmem:[%s731_s2] sm:$0xff]  ;;  %v475_v20 = vsel %vm297_vm3, 1.0, %v552_v6  ;;  %vm260_vm4 = vcmp.gt.f32.partialorder %v252_v16, 0.5  ;;  %v316_v23 = vadd.f32 %v474_v8, %v462_v7  ;;  %vm298_vm5 = vcmp.gt.f32.partialorder %v468_v21, 0.5  ;;  %v253_v27 = vld [vmem:[%s589_s16 + $0x30] sm:$0xff]  ;;  %v469_v29 = vld [vmem:[%s589_s16 + $0x38] sm:$0xff] }
  0x18   : > { %v312_v24 = vadd.f32 %v308_v14, %v270_v13  ;;  %v309_v25 = vmul.f32 %v475_v20, %v471_v11  ;;  %v464_v26 = vsel %vm260_vm4, 1.0, %v552_v6  ;;  %v257_v28 = vld [vmem:[%s594_s19 + $0x30] sm:$0xff]  ;;  %v325_v30 = vld [vmem:[%s731_s2 + $0x8] sm:$0xff]  ;;  %v476_v32 = vsel %vm298_vm5, 1.0, %v552_v6  ;;  %v473_v33 = vld [vmem:[%s594_s19 + $0x38] sm:$0xff] }
  0x19   : > { %v272_v31 = vmul.f32 %v464_v26, %v256_v17  ;;  %vm261_vm6 = vcmp.gt.f32.partialorder %v253_v27, 0.5  ;;  %vm299_vm7 = vcmp.gt.f32.partialorder %v469_v29, 0.5  ;;  %v478_v34 = vld [vmem:[%s731_s2 + $0x20] sm:$0xff]  ;;  %v310_v37 = vmul.f32 %v476_v32, %v472_v22  ;;  %v479_v39 = vld [vmem:[%s731_s2 + $0x28] sm:$0xff]  ;;  %v326_v40 = vld [vmem:[%s731_s2 + $0x10] sm:$0xff] }
  0x1a   : > { %v328_v35 = vadd.f32 %v324_v18, %v312_v24  ;;  %v313_v36 = vadd.f32 %v309_v25, %v271_v19  ;;  %v465_v38 = vsel %vm261_vm6, 1.0, %v552_v6  ;;  %v477_v42 = vsel %vm299_vm7, 1.0, %v552_v6  ;;  %v480_v45 = vld [vmem:[%s731_s2 + $0x30] sm:$0xff]  ;;  %v486_v46 = vld [vmem:[%s731_s2 + $0x40] sm:$0xff]  ;;  %v481_v51 = vld [vmem:[%s731_s2 + $0x38] sm:$0xff] }
  0x1b   : > { %v273_v41 = vmul.f32 %v465_v38, %v257_v28  ;;  %v341_v43 = vadd.f32 %v478_v34, %v316_v23  ;;  %v317_v44 = vadd.f32 %v475_v20, %v463_v15  ;;  %v314_v48 = vadd.f32 %v310_v37, %v272_v31  ;;  %v487_v52 = vld [vmem:[%s731_s2 + $0x48] sm:$0xff]  ;;  %v327_v53 = vld [vmem:[%s731_s2 + $0x18] sm:$0xff]  ;;  %v488_v58 = vld [vmem:[%s731_s2 + $0x50] sm:$0xff] }
  0x1c   : > { %332 = vst [vmem:[%s731_s2] sm:$0xff] %v328_v35  ;;  %v329_v47 = vadd.f32 %v325_v30, %v313_v36  ;;  %v311_v49 = vmul.f32 %v477_v42, %v473_v33  ;;  %v318_v50 = vadd.f32 %v476_v32, %v464_v26  ;;  %v319_v55 = vadd.f32 %v477_v42, %v465_v38  ;;  %v489_v63 = vld [vmem:[%s731_s2 + $0x58] sm:$0xff] }
  0x1d   : > { %482 = vst [vmem:[%s731_s2 + $0x20] sm:$0xff] %v341_v43  ;;  %v342_v54 = vadd.f32 %v479_v39, %v317_v44  ;;  %v354_v56 = vadd.f32 %v486_v46, %v320_v12  ;;  %v321_v57 = vadd.f32 %v471_v11, %v255_v9  ;;  %v330_v59 = vadd.f32 %v326_v40, %v314_v48 }
  0x1e   : > { %333 = vst [vmem:[%s731_s2 + $0x8] sm:$0xff] %v329_v47  ;;  %v315_v60 = vadd.f32 %v311_v49, %v273_v41  ;;  %v343_v61 = vadd.f32 %v480_v45, %v318_v50  ;;  %v322_v62 = vadd.f32 %v472_v22, %v256_v17  ;;  %v344_v0 = vadd.f32 %v481_v51, %v319_v55 }
  0x1f   : > { %483 = vst [vmem:[%s731_s2 + $0x28] sm:$0xff] %v342_v54  ;;  %490 = vst [vmem:[%s731_s2 + $0x40] sm:$0xff] %v354_v56  ;;  %v355_v1 = vadd.f32 %v487_v52, %v321_v57  ;;  %v323_v2 = vadd.f32 %v473_v33, %v257_v28 }
  0x20   : > { %334 = vst [vmem:[%s731_s2 + $0x10] sm:$0xff] %v330_v59  ;;  %v331_v3 = vadd.f32 %v327_v53, %v315_v60  ;;  %484 = vst [vmem:[%s731_s2 + $0x30] sm:$0xff] %v343_v61  ;;  %v356_v4 = vadd.f32 %v488_v58, %v322_v62 }
  0x21   : > { %485 = vst [vmem:[%s731_s2 + $0x38] sm:$0xff] %v344_v0  ;;  %491 = vst [vmem:[%s731_s2 + $0x48] sm:$0xff] %v355_v1  ;;  %v357_v5 = vadd.f32 %v489_v63, %v323_v2 }
  0x22   : > { %335 = vst [vmem:[%s731_s2 + $0x18] sm:$0xff] %v331_v3  ;;  %492 = vst [vmem:[%s731_s2 + $0x50] sm:$0xff] %v356_v4 }
  0x23   : > { %493 = vst [vmem:[%s731_s2 + $0x58] sm:$0xff] %v357_v5 }
  0x24 PF: > { %s12_s11 = sadd.s32 1, %s549_s11   ;;  %s732_s9 = smov %s545_s10 }
  0x25   : > { %p9_p6 = scmp.ge.s32.totalorder %s12_s11, 4   ;;  %s733_s10 = smov %s735_s12 }
  0x27   :  { %11 = sbr.rel (!%p9_p6) target bundleno = 2 (0x2), region = 69 }

</bundles_post_ra>
